<compile_context>
chip_gen: v5e
topology: v5e:2x2
jax: 0.10.0
libtpu: 0.0.40
codegen_flags: <defaults>
</compile_context>

<pallas_src>
import functools
import math

import numpy as np

import jax
import jax.numpy as jnp
from jax import lax
from jax.experimental import pallas as pl
from jax.experimental.pallas import tpu as pltpu

_EPS = 1e-5


# ----------------------------- kernels --------------------------------------


def _ln_rowwise_kernel(x_ref, w_ref, b_ref, o_ref, *, inv_c):
    """One LayerNorm row per tile row (last dim == C). Two-pass stats."""
    x = x_ref[...].astype(jnp.float32)                      # (T, C)
    mu = jnp.sum(x, axis=-1, keepdims=True) * inv_c
    d = x - mu
    var = jnp.sum(d * d, axis=-1, keepdims=True) * inv_c
    inv = lax.rsqrt(var + _EPS)
    o_ref[...] = (d * inv * w_ref[...] + b_ref[...]).astype(o_ref.dtype)


def _ln_packed_kernel(x_ref, w_ref, b_ref, seg_ref, o_ref, *, inv_c):
    """k LayerNorm rows packed per kc-lane kernel row (kc = k*C, lane-dense).

    seg_ref is a (kc, kc) block-diagonal 0/1 matrix (exact in bf16).  The f32
    operand is split into hi+lo bf16 halves, so each per-segment sum is two
    native bf16 MXU passes with f32 accumulation (rel. error ~2^-17); the 1/C
    scale is applied on the VPU.  Every load/store stays lane-dense (no
    vst.msk) which is the main bandwidth lever for C < 128.
    """
    x = x_ref[...].astype(jnp.float32)                      # (T, kc)
    seg = seg_ref[...]                                      # (kc, kc) bf16 0/1

    def seg_mean(v):
        hi = v.astype(jnp.bfloat16)
        lo = (v - hi.astype(jnp.float32)).astype(jnp.bfloat16)
        s = (jnp.dot(hi, seg, preferred_element_type=jnp.float32)
             + jnp.dot(lo, seg, preferred_element_type=jnp.float32))
        return s * inv_c

    mu = seg_mean(x)                                        # broadcast per segment
    d = x - mu
    var = seg_mean(d * d)                                   # centered -> no cancellation
    inv = lax.rsqrt(var + _EPS)
    o_ref[...] = (d * inv * w_ref[...] + b_ref[...]).astype(o_ref.dtype)


# --------------------------- wrapper helpers ---------------------------------


def _round_up(a, m):
    return -(-a // m) * m


@functools.lru_cache(maxsize=1)
def _device_defaults():
    """(block_bytes, vmem_limit_bytes) sized per TPU generation."""
    vmem_phys = 64 << 20                     # conservative (v7x-sized) fallback
    try:
        info = pltpu.get_tpu_info()
        vmem_phys = int(getattr(info, "vmem_capacity_bytes", vmem_phys))
    except Exception:
        pass
    if vmem_phys >= (96 << 20):              # v5e / v6e: 128 MiB physical VMEM
        return (4 << 20), (64 << 20)
    return (2 << 20), (32 << 20)             # v7x-class: 64 MiB physical VMEM


def _pick_tile(n_rows, row_width, itemsize, block_bytes):
    """Rows per block.

    ~block_bytes of f32 working set (stats are f32 regardless of input dtype),
    sublane-aligned, and capped so the grid keeps >=2 (ideally >=4) steps:
    grid=1 would disable both megacore sharding and DMA/compute pipelining.
    """
    n_rows = int(n_rows)
    sub = 8 * max(1, 4 // int(itemsize))                 # f32: 8, bf16: 16, i8: 32
    if n_rows < 2 * sub:
        return max(1, n_rows)                            # single full-extent block
    lanes = _round_up(int(row_width), 128)               # VMEM lane padding
    tile = max(sub, (int(block_bytes) // (lanes * 4)) // sub * sub)
    min_steps = 4 if n_rows >= 4 * sub else 2
    cap = _round_up(-(-n_rows // min_steps), sub)        # guarantees cap < n_rows
    return min(tile, cap)


def _packing(c):
    """Return (k, kc): fold k LayerNorm rows into one kc-lane kernel row.

    kc = lcm(C, 128).  Pack when C < 128 and either kc <= 256, or kc <= 512 and
    the row-wise path would use at most half the lanes (2*C <= 128).  C=96-style
    widths (75% lane use) stay row-wise: the seg matmul cost would not pay off
    on v5e/v7x.  kc is not widened to 256 on v6e: with a block-diagonal seg the
    MXU work scales with kc, so widening is not free there.
    """
    c = int(c)
    if c >= 128 or c < 1:
        return 1, c
    kc = (c * 128) // math.gcd(c, 128)
    k = kc // c
    if kc <= 256 or (kc <= 512 and 2 * c <= 128):
        return k, kc
    return 1, c


@functools.lru_cache(maxsize=None)
def _seg_matrix_np(c, kc):
    lane = np.arange(kc)
    return (lane[:, None] // c == lane[None, :] // c).astype(np.float32)


def _rowwise_call(x2, w32, b32, block_bytes, vmem_limit):
    rows, c = x2.shape
    tile = _pick_tile(rows, c, x2.dtype.itemsize, block_bytes)
    grid = (pl.cdiv(rows, tile),)            # ragged tail handled by Pallas
    kernel = functools.partial(_ln_rowwise_kernel, inv_c=1.0 / c)
    return pl.pallas_call(
        kernel,
        out_shape=jax.ShapeDtypeStruct((rows, c), x2.dtype),
        grid_spec=pltpu.PrefetchScalarGridSpec(
            num_scalar_prefetch=0,
            grid=grid,
            in_specs=[
                pl.BlockSpec((tile, c), lambda i: (i, 0)),
                pl.BlockSpec((1, c), lambda i: (0, 0)),
                pl.BlockSpec((1, c), lambda i: (0, 0)),
            ],
            out_specs=pl.BlockSpec((tile, c), lambda i: (i, 0)),
        ),
        compiler_params=pltpu.CompilerParams(
            dimension_semantics=("parallel",),
            vmem_limit_bytes=vmem_limit,
        ),
    )(x2, w32, b32)


def _packed_call(x2, w32, b32, k, kc, block_bytes, vmem_limit):
    rows, c = x2.shape                       # rows % k == 0 (caller guarantees)
    rows_p = rows // k
    xp = x2.reshape(rows_p, kc)              # contiguous re-view, no copy
    wp = jnp.tile(w32, (1, k))               # lane l -> weight[l % C]
    bp = jnp.tile(b32, (1, k))
    seg = jnp.asarray(_seg_matrix_np(c, kc), dtype=jnp.bfloat16)  # 0/1: exact bf16

    tile = _pick_tile(rows_p, kc, xp.dtype.itemsize, block_bytes)
    grid = (pl.cdiv(rows_p, tile),)          # ragged tail handled by Pallas
    kernel = functools.partial(_ln_packed_kernel, inv_c=1.0 / c)
    out = pl.pallas_call(
        kernel,
        out_shape=jax.ShapeDtypeStruct((rows_p, kc), xp.dtype),
        grid_spec=pltpu.PrefetchScalarGridSpec(
            num_scalar_prefetch=0,
            grid=grid,
            in_specs=[
                pl.BlockSpec((tile, kc), lambda i: (i, 0)),
                pl.BlockSpec((1, kc), lambda i: (0, 0)),
                pl.BlockSpec((1, kc), lambda i: (0, 0)),
                pl.BlockSpec((kc, kc), lambda i: (0, 0)),
            ],
            out_specs=pl.BlockSpec((tile, kc), lambda i: (i, 0)),
        ),
        compiler_params=pltpu.CompilerParams(
            dimension_semantics=("parallel",),
            vmem_limit_bytes=vmem_limit,
        ),
    )(xp, wp, bp, seg)
    return out.reshape(rows, c)


def withbias_layernorm(x, weight, bias, *, block_bytes=None):
    """WithBias_LayerNorm forward: normalize over the last axis, scale + shift."""
    orig_shape = x.shape
    c = int(orig_shape[-1])
    rows = int(math.prod(orig_shape[:-1]))

    default_bytes, vmem_limit = _device_defaults()
    if block_bytes is None:
        block_bytes = default_bytes

    # Cast affine params to f32 once here (not per grid step inside the kernel).
    w32 = weight.astype(jnp.float32).reshape(1, c)
    b32 = bias.astype(jnp.float32).reshape(1, c)
    x2 = x.reshape(rows, c)

    k, kc = _packing(c)
    if k > 1 and rows >= k:
        rows_hi = (rows // k) * k
        if rows_hi == rows:
            out = _packed_call(x2, w32, b32, k, kc, block_bytes, vmem_limit)
        else:
            # Rare ragged case: lane-packed head + tiny (<k rows) row-wise tail.
            # The concatenate re-copies the head once, which is still far
            # cheaper than running the whole tensor through the masked
            # (C/128-lane-utilization) row-wise path.
            head = _packed_call(x2[:rows_hi], w32, b32, k, kc,
                                block_bytes, vmem_limit)
            tail = _rowwise_call(x2[rows_hi:], w32, b32, block_bytes, vmem_limit)
            out = jnp.concatenate([head, tail], axis=0)
        return out.reshape(orig_shape)

    out = _rowwise_call(x2, w32, b32, block_bytes, vmem_limit)
    return out.reshape(orig_shape)


# ------------------------------ reference ------------------------------------


def withbias_layernorm_ref(x, weight, bias):
    x = x.astype(jnp.float32)
    mu = jnp.mean(x, axis=-1, keepdims=True)
    var = jnp.mean((x - mu) ** 2, axis=-1, keepdims=True)
    return (x - mu) / jnp.sqrt(var + _EPS) * weight.astype(jnp.float32) \
        + bias.astype(jnp.float32)


if __name__ == "__main__":
    key = jax.random.PRNGKey(0)
    k0, k1, k2 = jax.random.split(key, 3)

    # Main case: LaKDNet layout (B, H*W, C), LayerNorm over C = 32.
    # rows=128, k=4, rows_p=32 -> 4-step lane-packed grid.
    B, N, C = 2, 64, 32
    x = jax.random.normal(k0, (B, N, C), dtype=jnp.float32)
    weight = jnp.ones((C,), dtype=jnp.float32)   # nn.Parameter(torch.ones(C))
    bias = jnp.zeros((C,), dtype=jnp.float32)    # nn.Parameter(torch.zeros(C))

    out = jax.block_until_ready(withbias_layernorm(x, weight, bias))
    ref = withbias_layernorm_ref(x, weight, bias)
    assert out.shape == x.shape and out.dtype == x.dtype
    assert jnp.allclose(out, ref, atol=1e-4, rtol=1e-4)

    # Non-trivial affine params + explicit small block size (multi-block grid).
    w2 = jax.random.normal(k1, (C,), dtype=jnp.float32)
    b2 = jax.random.normal(k2, (C,), dtype=jnp.float32)
    out2 = jax.block_until_ready(withbias_layernorm(x, w2, b2, block_bytes=12288))
    ref2 = withbias_layernorm_ref(x, w2, b2)
    assert jnp.allclose(out2, ref2, atol=1e-4, rtol=1e-4)

    # C = 48: generalized packing (k=8, kc=384) with rows % k != 0
    # -> packed head (16 rows) + row-wise tail (5 rows), stitched.
    C3 = 48
    x3 = jax.random.normal(k1, (3, 7, C3), dtype=jnp.float32)
    w3 = jax.random.normal(k2, (C3,), dtype=jnp.float32)
    b3 = jax.random.normal(k0, (C3,), dtype=jnp.float32)
    out3 = jax.block_until_ready(withbias_layernorm(x3, w3, b3))
    ref3 = withbias_layernorm_ref(x3, w3, b3)
    assert jnp.allclose(out3, ref3, atol=1e-4, rtol=1e-4)

    # C = 96 stays on the row-wise path by policy; ragged last row block.
    C4 = 96
    x4 = jax.random.normal(k2, (2, 9, C4), dtype=jnp.float32)
    w4 = jax.random.normal(k0, (C4,), dtype=jnp.float32)
    b4 = jax.random.normal(k1, (C4,), dtype=jnp.float32)
    out4 = jax.block_until_ready(withbias_layernorm(x4, w4, b4))
    ref4 = withbias_layernorm_ref(x4, w4, b4)
    assert jnp.allclose(out4, ref4, atol=1e-4, rtol=1e-4)

    print("KERNEL_OK")
</pallas_src>

<mosaic_0001>
module attributes {stable_mosaic.version = 11 : i64} {
  func.func @_ln_packed_kernel(%arg0: i32, %arg1: memref<8x128xf32, #tpu.memory_space<vmem>>, %arg2: memref<1x128xf32, #tpu.memory_space<vmem>>, %arg3: memref<1x128xf32, #tpu.memory_space<vmem>>, %arg4: memref<128x128xbf16, #tpu.memory_space<vmem>>, %arg5: memref<8x128xf32, #tpu.memory_space<vmem>>) attributes {dimension_semantics = [#tpu.dimension_semantics<parallel>], iteration_bounds = array<i64: 4>, scalar_prefetch = 0 : i64, scratch_operands = 0 : i64, tpu.core_type = #tpu.core_type<tc>, window_params = [{transform_indices = @transform_0, window_bounds = array<i64: 8, 128>}, {pipeline_mode = #tpu.pipeline_mode<synchronous>, transform_indices = @transform_1, window_bounds = array<i64: 1, 128>}, {pipeline_mode = #tpu.pipeline_mode<synchronous>, transform_indices = @transform_2, window_bounds = array<i64: 1, 128>}, {pipeline_mode = #tpu.pipeline_mode<synchronous>, transform_indices = @transform_3, window_bounds = array<i64: 128, 128>}, {transform_indices = @transform_4, window_bounds = array<i64: 8, 128>}]} {
    %c0 = arith.constant 0 : index
    %c0_0 = arith.constant 0 : index
    %0 = vector.load %arg1[%c0, %c0_0] : memref<8x128xf32, #tpu.memory_space<vmem>>, vector<8x128xf32>
    %c0_1 = arith.constant 0 : index
    %c0_2 = arith.constant 0 : index
    %1 = vector.load %arg4[%c0_1, %c0_2] : memref<128x128xbf16, #tpu.memory_space<vmem>>, vector<128x128xbf16>
    %2 = arith.truncf %0 : vector<8x128xf32> to vector<8x128xbf16>
    %3 = arith.extf %2 : vector<8x128xbf16> to vector<8x128xf32>
    %4 = arith.subf %0, %3 : vector<8x128xf32>
    %5 = arith.truncf %4 : vector<8x128xf32> to vector<8x128xbf16>
    %cst = arith.constant dense<0.000000e+00> : vector<8x128xf32>
    %6 = tpu.matmul %2, %1, %cst {dimension_numbers = #tpu.dot_dimension_numbers<[1], [0], [0], [1], [0, 0, 1, 1], [], []>} : vector<8x128xbf16>, vector<128x128xbf16>, vector<8x128xf32> -> vector<8x128xf32>
    %cst_3 = arith.constant dense<0.000000e+00> : vector<8x128xf32>
    %7 = tpu.matmul %5, %1, %cst_3 {dimension_numbers = #tpu.dot_dimension_numbers<[1], [0], [0], [1], [0, 0, 1, 1], [], []>} : vector<8x128xbf16>, vector<128x128xbf16>, vector<8x128xf32> -> vector<8x128xf32>
    %8 = arith.addf %6, %7 : vector<8x128xf32>
    %cst_4 = arith.constant 3.125000e-02 : f32
    %9 = vector.broadcast %cst_4 : f32 to vector<8x128xf32>
    %10 = arith.mulf %8, %9 : vector<8x128xf32>
    %11 = arith.subf %0, %10 : vector<8x128xf32>
    %12 = arith.mulf %11, %11 : vector<8x128xf32>
    %13 = arith.truncf %12 : vector<8x128xf32> to vector<8x128xbf16>
    %14 = arith.extf %13 : vector<8x128xbf16> to vector<8x128xf32>
    %15 = arith.subf %12, %14 : vector<8x128xf32>
    %16 = arith.truncf %15 : vector<8x128xf32> to vector<8x128xbf16>
    %cst_5 = arith.constant dense<0.000000e+00> : vector<8x128xf32>
    %17 = tpu.matmul %13, %1, %cst_5 {dimension_numbers = #tpu.dot_dimension_numbers<[1], [0], [0], [1], [0, 0, 1, 1], [], []>} : vector<8x128xbf16>, vector<128x128xbf16>, vector<8x128xf32> -> vector<8x128xf32>
    %cst_6 = arith.constant dense<0.000000e+00> : vector<8x128xf32>
    %18 = tpu.matmul %16, %1, %cst_6 {dimension_numbers = #tpu.dot_dimension_numbers<[1], [0], [0], [1], [0, 0, 1, 1], [], []>} : vector<8x128xbf16>, vector<128x128xbf16>, vector<8x128xf32> -> vector<8x128xf32>
    %19 = arith.addf %17, %18 : vector<8x128xf32>
    %cst_7 = arith.constant 3.125000e-02 : f32
    %20 = vector.broadcast %cst_7 : f32 to vector<8x128xf32>
    %21 = arith.mulf %19, %20 : vector<8x128xf32>
    %cst_8 = arith.constant 9.99999974E-6 : f32
    %22 = vector.broadcast %cst_8 : f32 to vector<8x128xf32>
    %23 = arith.addf %21, %22 : vector<8x128xf32>
    %24 = math.rsqrt %23 : vector<8x128xf32>
    %25 = arith.mulf %11, %24 : vector<8x128xf32>
    %c0_9 = arith.constant 0 : index
    %c0_10 = arith.constant 0 : index
    %26 = vector.load %arg2[%c0_9, %c0_10] : memref<1x128xf32, #tpu.memory_space<vmem>>, vector<1x128xf32>
    %27 = vector.broadcast %26 : vector<1x128xf32> to vector<8x128xf32>
    %28 = arith.mulf %25, %27 : vector<8x128xf32>
    %c0_11 = arith.constant 0 : index
    %c0_12 = arith.constant 0 : index
    %29 = vector.load %arg3[%c0_11, %c0_12] : memref<1x128xf32, #tpu.memory_space<vmem>>, vector<1x128xf32>
    %30 = vector.broadcast %29 : vector<1x128xf32> to vector<8x128xf32>
    %31 = arith.addf %28, %30 : vector<8x128xf32>
    %c0_13 = arith.constant 0 : index
    %c0_14 = arith.constant 0 : index
    %32 = vector.load %arg5[%c0_13, %c0_14] : memref<8x128xf32, #tpu.memory_space<vmem>>, vector<8x128xf32>
    tpu.vector_store %arg5[%c0_13, %c0_14], %31 {strides = array<i32>} : memref<8x128xf32, #tpu.memory_space<vmem>>, vector<8x128xf32>,
    return
  }
  func.func @transform_0(%arg0: i32) -> (i32, i32) {
    %c0_i32 = arith.constant 0 : i32
    %c0_i32_0 = arith.constant 0 : i32
    return %arg0, %c0_i32 : i32, i32
  }
  func.func @transform_1(%arg0: i32) -> (i32, i32) {
    %c0_i32 = arith.constant 0 : i32
    %c0_i32_0 = arith.constant 0 : i32
    %c0_i32_1 = arith.constant 0 : i32
    return %c0_i32, %c0_i32_0 : i32, i32
  }
  func.func @transform_2(%arg0: i32) -> (i32, i32) {
    %c0_i32 = arith.constant 0 : i32
    %c0_i32_0 = arith.constant 0 : i32
    %c0_i32_1 = arith.constant 0 : i32
    return %c0_i32, %c0_i32_0 : i32, i32
  }
  func.func @transform_3(%arg0: i32) -> (i32, i32) {
    %c0_i32 = arith.constant 0 : i32
    %c0_i32_0 = arith.constant 0 : i32
    %c0_i32_1 = arith.constant 0 : i32
    return %c0_i32, %c0_i32_0 : i32, i32
  }
  func.func @transform_4(%arg0: i32) -> (i32, i32) {
    %c0_i32 = arith.constant 0 : i32
    %c0_i32_0 = arith.constant 0 : i32
    return %arg0, %c0_i32 : i32, i32
  }
}

</mosaic_0001>

<bundles_post_ra>
// kernel: tpu_custom_call.1
= control target key start
LH: loop header
LB: loop body
LE: loop exit
PB: predicated region body
PF: predicated region fallthrough
CT: control target
= control target key end

     0   :  { %9 = vsyncpa [#allocation3], 0  ;;  %s969_s0 = inlined_call_operand.hbm [shape: f32[32,128], index: 0, kind: input, shape index: {}]   ;;  %s970_s1 = inlined_call_operand.hbm [shape: f32[1,128], index: 1, kind: input, shape index: {}]   ;;  %s971_s2 = inlined_call_operand.vmem [shape: f32[1,128], index: 2, kind: input, shape index: {}]   ;;  %s972_s3 = inlined_call_operand.hbm [shape: bf16[128,128], index: 3, kind: input, shape index: {}]   ;;  %s973_s4 = inlined_call_operand.hbm [shape: f32[32,128], index: 4, kind: output, shape index: {}]  }
   0x1   :  { %11 = vsyncpa [#allocation3 + $0x1], 0 }
   0x2   :  { %12 = vsyncpa [#allocation6], 0 }
   0x3   :  { %13 = vsyncpa [#allocation4], 0 }
   0x4   :  { %15 = vsyncpa [#allocation4 + $0x1], 0  ;;  %s823_s15 = smov 0   ;;  %s825_s16 = smov 0  }
   0x5   :  { %s827_s17 = smov 0   ;;  %s829_s18 = smov 0  }
   0x6 LB: > { %s844_s19 = sadd.s32 4294967295, %s792_s18   ;;  %s503_s20 = sadd.s32 4294967294, %s792_s18   ;;  %s792_s18 = sphi %s829_s18, %s982_s18   ;;  %s788_s17 = sphi %s827_s17, %s981_s17   ;;  %s784_s16 = sphi %s825_s16, %s980_s16   ;;  %s780_s15 = sphi %s823_s15, %s979_s15  }
   0x7   : > { %p41_p0 = scmp.ne.s32.totalorder %s784_s16, %s780_s15  ;;  %p42_p1 = scmp.eq.s32.totalorder %s844_s19, 0 }
   0x8   : > { %p128_p2 = scmp.eq.s32.totalorder %s844_s19, 3  ;;  %p134_p3 = scmp.eq.s32.totalorder %s503_s20, 3 }
   0x9   : > { %p853_p4 = por %p42_p1, %p41_p0  ;;  %p504_p5 = scmp.ge.s32.totalorder %s792_s18, 1 }
   0xa   : > { %p858_p6 = por %p134_p3, %p41_p0  ;;  %p141_p7 = scmp.lt.s32.totalorder %s792_s18, 5 }
   0xb   : > { %s153_s25 = sshll.u32 %s970_s1, 4  ;;  %s794_s27 = smov [#allocation5]   ;;  %s154_s25 = int_to_ptr.hbm [resolvable:$true] %s153_s25 }
   0xc   : > { %p866_p8 = pnand %p504_p5, %p141_p7  ;;  %s155_s28 = sshll.u32 %s794_s27, 4  ;;  %s156_s28 = int_to_ptr.vmem [resolvable:$true] %s155_s28 }
   0xd   : > { %s167_s5 = sshll.u32 %s972_s3, 4  ;;  %s795_s6 = smov [#allocation7]   ;;  %s168_s5 = int_to_ptr.hbm [resolvable:$true] %s167_s5 }
   0xe   : > { %p571_p9 = pneg %p866_p8  ;;  %s169_s7 = sshll.u32 %s795_s6, 4  ;;  %s170_s7 = int_to_ptr.vmem [resolvable:$true] %s169_s7 }
   0xf   : > { %s796_s8 = smov 64   ;;  %s797_s9 = smov 4  }
  0x10   : > { %p572_p10 = pnand %p571_p9, %p42_p1  ;;  %s878_s10 = sadd.s32 1, %s792_s18  }
  0x11   : > { %s25_s11 = ssub.s32 %s792_s18, %s878_s10  ;;  %s28_s12 = sadd.s32 1, %s788_s17 }
  0x12   : > { %574 = dma.hbm_to_vmem [thread:$0]  (!%p572_p10), %s154_s25, 16, %s156_s28, [#allocation6]  }
  0x13   : > { %577 = dma.hbm_to_vmem [thread:$0]  (!%p572_p10), %s168_s5, 1024, %s170_s7, [#allocation6], %s796_s8, %s796_s8, %s797_s9  }
  0x14   : > { %p26_p11 = scmp.eq.s32.totalorder %s25_s11, 0  ;;  %p35_p12 = scmp.ne.s32.totalorder %s788_s17, %s784_s16 }
  0x15   : > { %p36_p13 = scmp.eq.s32.totalorder %s792_s18, 0  ;;  %p588_p5 = scmp.lt.s32.totalorder %s792_s18, 4 }
  0x16   : > { %s887_s13 = scalar_select %p26_p11, %s788_s17, %s28_s12  }
  0x17   : > { %p37_p0 = por %p36_p13, %p35_p12  ;;  %p891_p3 = por %p128_p2, %p35_p12 }
  0x18   : > { %s183_s20 = sand.u32 1, %s788_s17   ;;  %s509_s24 = sshll.u32 %s792_s18, 3 }
  0x19   : > { %s508_s23 = sshll.u32 %s183_s20, 3  ;;  %s191_s28 = scalar_lea.hbm %s969_s0, %s509_s24 }
  0x1a   : > { %s187_s29 = scalar_lea.vmem [#allocation2], %s508_s23  ;;  %s193_s5 = sshll.u32 %s191_s28, 4  ;;  %s194_s5 = int_to_ptr.hbm [resolvable:$true] %s193_s5 }
  0x1b   : > { %s195_s30 = sshll.u32 %s187_s29, 4  ;;  %p901_p7 = pnand %p588_p5, %p37_p0  ;;  %s196_s30 = int_to_ptr.vmem [resolvable:$true] %s195_s30 }
  0x1c   : > { %s184_s7 = scalar_lea.sflag [#allocation3], %s183_s20  ;;  %s692_s8 = sshra.s32 %s194_s5, 4  ;;  %s693_s8 = int_to_ptr.hbm [resolvable:$true] %s692_s8 }
  0x1d   : > { %s694_s9 = scalar_lea.hbm %s693_s8, 8  ;;  %p696_p9 = pneg %p901_p7 }
  0x1e   : > { %p695_p2 = scmp.ne.s32.totalorder %s693_s8, %s694_s9  ;;  %s699_s23 = scalar_lea.hbm %s969_s0, 32 }
  0x1f   : > { %p700_p12 = scmp.lt.s32.totalorder %s693_s8, %s969_s0  ;;  %p701_p13 = scmp.lt.s32.totalorder %s699_s23, %s694_s9 }
  0x20   : > { %p697_p10 = pnand %p696_p9, %p695_p2 }
  0x21   : > { %p702_p0 = por %p701_p13, %p700_p12 }
  0x22   : > { %p698_p11 = pneg %p697_p10 }
  0x24   : > { %p703_p5 = pnand %p702_p0, %p698_p11 }
  0x26   : > { %706 = shalt.err (!%p703_p5)
}
  0x27   : > { %581 = dma.hbm_to_vmem [thread:$0]  (!%p901_p7), %s194_s5, 128, %s196_s30, %s184_s7  }
  0x28   : > { %204 = sbr.rel (%p866_p8) target bundleno = 387 (0x183), region = 36  ;;  %s918_s20 = sand.u32 (!%p866_p8), 1, %s784_s16  }
  0x29   : > { %s511_s27 = sshll.u32 (!%p866_p8), %s918_s20, 3  ;;  %s207_s28 = scalar_lea.sflag (!%p866_p8), [#allocation3], %s918_s20 }
  0x2a   : > { %s210_s29 = scalar_lea.vmem (!%p866_p8), [#allocation2], %s511_s27 }
  0x2d   : > { %767 = dma.done.wait (%p853_p4), %s207_s28, 128  }
  0x2e   : > { %769 = vsyncadd (%p853_p4), %s207_s28, 4294967168 }
  0x2f   : > { %771 = dma.done.wait (%p42_p1), [#allocation6], 1040  }
  0x30   : > { %773 = vsyncadd (%p42_p1), [#allocation6], 4294966256  ;;  %v558_v0 = vld [vmem:[#allocation7 + $0x38] sm:$0xff]  ;;  %v557_v1 = vld [vmem:[#allocation7 + $0x30] sm:$0xff]  ;;  %s548_s21 = sshll.u32 %s844_s19, 3  ;;  %s245_s8 = scalar_lea.vmem [#allocation8], %s511_s27 }
  0x31   : > { %315 = vmatpush.bf16.msra.mxu0 %v558_v0  ;;  %328 = vmatpush.bf16.msra.mxu1 %v558_v0  ;;  %v556_v2 = vld [vmem:[#allocation7 + $0x28] sm:$0xff]  ;;  %v555_v3 = vld [vmem:[#allocation7 + $0x20] sm:$0xff]  ;;  %v554_v4 = vld [vmem:[#allocation7 + $0x18] sm:$0xff]  ;;  %s409_s5 = scalar_lea.hbm %s973_s4, %s548_s21  ;;  %s411_s9 = sshll.u32 %s245_s8, 4  ;;  %s412_s9 = int_to_ptr.vmem [resolvable:$true] %s411_s9 }
  0x32   : > { %361 = vmatpush.bf16.msra.mxu3 %v558_v0  ;;  %348 = vmatpush.bf16.msra.mxu2 %v558_v0  ;;  %v246_v5 = vld [vmem:[%s210_s29] sm:$0xff]  ;;  %v551_v11 = vld [vmem:[#allocation7] sm:$0xff]  ;;  %v628_v38 = vld [vmem:[#allocation5] ss:$0 sm:$0xff]  ;;  %s413_s19 = sshll.u32 %s409_s5, 4  ;;  %s399_s11 = scalar_lea.sflag [#allocation4], %s918_s20  ;;  %s414_s19 = int_to_ptr.hbm [resolvable:$true] %s413_s19 }
  0x33   : > { %v263_v6 = vpack.c.bf16 %v246_v5, %v246_v5  ;;  %v553_v7 = vld [vmem:[#allocation7 + $0x10] sm:$0xff]  ;;  %v552_v9 = vld [vmem:[#allocation7 + $0x8] sm:$0xff]  ;;  %s736_s12 = sshra.s32 %s414_s19, 4  ;;  %s742_s28 = scalar_lea.hbm %s973_s4, 32  ;;  %s737_s12 = int_to_ptr.hbm [resolvable:$true] %s736_s12 }
  0x34   : > { %v629_v41 = vld [vmem:[%s971_s2] ss:$0 sm:$0xff]  ;;  %s738_s23 = scalar_lea.hbm %s737_s12, 8  ;;  %p743_p7 = scmp.lt.s32.totalorder %s737_s12, %s973_s4 }
  0x35   : > { %316 = vmatpush.bf16.msra.mxu0 %v557_v1  ;;  %329 = vmatpush.bf16.msra.mxu1 %v557_v1  ;;  %v264_v8 = vunpack.c.l.bf16 %v263_v6  ;;  %p739_p1 = scmp.ne.s32.totalorder %s737_s12, %s738_s23  ;;  %p744_p2 = scmp.lt.s32.totalorder %s742_s28, %s738_s23 }
  0x36   : > { %362 = vmatpush.bf16.msra.mxu3 %v557_v1  ;;  %349 = vmatpush.bf16.msra.mxu2 %v557_v1 }
  0x37   : > { %v265_v10 = vsub.f32 %v246_v5, %v264_v8  ;;  %p740_p4 = pnand %p739_p1, %p891_p3  ;;  %p745_p9 = por %p744_p2, %p743_p7 }
  0x39   : > { %317 = vmatpush.bf16.msra.mxu0 %v556_v2  ;;  %330 = vmatpush.bf16.msra.mxu1 %v556_v2  ;;  %v266_v12 = vpack.c.bf16 %v265_v10, %v265_v10  ;;  %p741_p8 = pneg %p740_p4 }
  0x3a   : > { %363 = vmatpush.bf16.msra.mxu3 %v556_v2  ;;  %350 = vmatpush.bf16.msra.mxu2 %v556_v2 }
  0x3b   : > { %p746_p10 = pnand %p745_p9, %p741_p8 }
  0x3d   : > { %318 = vmatpush.bf16.msra.mxu0 %v555_v3  ;;  %331 = vmatpush.bf16.msra.mxu1 %v555_v3 }
  0x3e   : > { %364 = vmatpush.bf16.msra.mxu3 %v555_v3  ;;  %351 = vmatpush.bf16.msra.mxu2 %v555_v3 }
  0x41   : > { %319 = vmatpush.bf16.msra.mxu0 %v554_v4  ;;  %332 = vmatpush.bf16.msra.mxu1 %v554_v4 }
  0x42   : > { %365 = vmatpush.bf16.msra.mxu3 %v554_v4  ;;  %352 = vmatpush.bf16.msra.mxu2 %v554_v4 }
  0x45   : > { %320 = vmatpush.bf16.msra.mxu0 %v553_v7  ;;  %333 = vmatpush.bf16.msra.mxu1 %v553_v7 }
  0x46   : > { %366 = vmatpush.bf16.msra.mxu3 %v553_v7  ;;  %353 = vmatpush.bf16.msra.mxu2 %v553_v7 }
  0x49   : > { %321 = vmatpush.bf16.msra.mxu0 %v552_v9  ;;  %334 = vmatpush.bf16.msra.mxu1 %v552_v9 }
  0x4a   : > { %367 = vmatpush.bf16.msra.mxu3 %v552_v9  ;;  %354 = vmatpush.bf16.msra.mxu2 %v552_v9 }
  0x4d   : > { %322 = vmatpush.bf16.msra.mxu0 %v551_v11  ;;  %335 = vmatpush.bf16.msra.mxu1 %v551_v11 }
  0x4e   : > { %368 = vmatpush.bf16.msra.mxu3 %v551_v11  ;;  %355 = vmatpush.bf16.msra.mxu2 %v551_v11 }
  0x50   : > { %323 = vmatmul.bf16.vlgmr.msra.gmra.mxu0 %v266_v12  ;;  %336 = vmatmul.bf16.vlgmr.msra.gmra.mxu1 %v263_v6 }
  0xcd   : > { %v324_v13 = vpop.f32.mrf.mxu0  ;;  %v337_v14 = vpop.f32.mrf.mxu1 }
  0xce   : > { %v338_v15 = vadd.f32 %v337_v14, %v324_v13 }
  0xd0   : > { %v341_v16 = vmul.f32 0.03125, %v338_v15 }
  0xd2   : > { %v342_v17 = vsub.f32 %v246_v5, %v341_v16 }
  0xd4   : > { %v343_v18 = vmul.f32 %v342_v17, %v342_v17 }
  0xd5   : > { %v326_v19 = vpop.f32.mrf.mxu0  ;;  %v339_v20 = vpop.f32.mrf.mxu1 }
  0xd6   : > { %v344_v21 = vpack.c.bf16 %v343_v18, %v343_v18 }
  0xd8   : > { %v345_v22 = vunpack.c.l.bf16 %v344_v21  ;;  %369 = vmatmul.bf16.vlgmr.msra.gmra.mxu3 %v344_v21 }
  0xda   : > { %v346_v23 = vsub.f32 %v343_v18, %v345_v22 }
  0xdc   : > { %v347_v24 = vpack.c.bf16 %v346_v23, %v346_v23 }
  0xde   : > { %356 = vmatmul.bf16.vlgmr.msra.gmra.mxu2 %v347_v24 }
 0x15b   : > { %v370_v25 = vpop.f32.mrf.mxu3 }
 0x161   : > { %v357_v26 = vpop.f32.mrf.mxu2 }
 0x162   : > { %v371_v27 = vadd.f32 %v370_v25, %v357_v26 }
 0x163   : > { %v372_v28 = vpop.f32.mrf.mxu3 }
 0x164   : > { %v374_v29 = vmul.f32 0.03125, %v371_v27 }
 0x166   : > { %v375_v30 = vadd.f32 1e-05, %v374_v29 }
 0x168   : > { %630 = vrsqrt.f32 %v375_v30  ;;  %vm382_vm1 = vweird.f32 %v375_v30 }
 0x169   : > { %v359_v31 = vpop.f32.mrf.mxu2 }
 0x16e   : > { %v631_v32 = vpop.eup %630 }
 0x16f   : > { %v377_v33 = vmul.f32 %v631_v32, %v375_v30  ;;  %vm383_vm0 = vweird.f32 %v631_v32 }
 0x170   : > { %vm384_vm2 = vmor %vm382_vm1, %vm383_vm0 }
 0x171   : > { %v378_v34 = vmul.f32 %v631_v32, %v377_v33 }
 0x173   : > { %v379_v35 = vmul.f32 0.5, %v378_v34 }
 0x175   : > { %v380_v36 = vsub.f32 1.5, %v379_v35 }
 0x177   : > { %v381_v37 = vmul.f32 %v631_v32, %v380_v36 }
 0x179   : > { %v385_v39 = vsel %vm384_vm2, %v631_v32, %v381_v37 }
 0x17a   : > { %v386_v40 = vmul.f32 %v385_v39, %v342_v17 }
 0x17c   : > { %v391_v42 = vmul.f32 %v628_v38, %v386_v40 }
 0x17e   : > { %v396_v43 = vadd.f32 %v629_v41, %v391_v42 }
 0x180   : > { %397 = vst [vmem:[%s245_s8] sm:$0xff] %v396_v43 }
 0x181   : > { %749 = shalt.err (!%p746_p10)
}
 0x182   : > { %569 = dma.vmem_to_hbm [thread:$0]  (%p891_p3), %s412_s9, 128, %s414_s19, %s399_s11  }
 0x183 PF: > { %p591_p11 = scmp.ge.s32.totalorder %s792_s18, 2  ;;  %s425_s20 = sand.u32 1, %s780_s15  }
 0x184   : > { %s426_s21 = scalar_lea.sflag [#allocation4], %s425_s20 }
 0x185   : > { %p583_p12 = pnand %p591_p11, %p858_p6 }
 0x187   : > { %p584_p13 = pneg %p583_p12 }
 0x189   : > { %775 = dma.done.wait (%p584_p13), %s426_s21, 128  }
 0x18a   : > { %777 = vsyncadd (%p584_p13), %s426_s21, 4294967168  ;;  %p18_p0 = scmp.ge.s32.totalorder %s878_s10, 6   ;;  %s979_s15 = smov %s784_s16 }
 0x18b   : > { %s980_s16 = smov %s788_s17  ;;  %s981_s17 = smov %s887_s13 }
 0x18c   : > { %s982_s18 = smov %s878_s10  ;;  %20 = sbr.rel (!%p18_p0) target bundleno = 6 (0x6), region = 89 }
 0x191   :  { %432 = vsyncpa [#allocation3], 1 }
 0x192   :  { %434 = vsyncpa [#allocation3 + $0x1], 1 }
 0x193   :  { %435 = vsyncpa [#allocation6], 1 }
 0x194   :  { %436 = vsyncpa [#allocation4], 1 }
 0x195   :  { %438 = vsyncpa [#allocation4 + $0x1], 1 }

</bundles_post_ra>
